<compile_context>
chip_gen: v6e
topology: v6e:2x2x1
jax: 0.10.0
libtpu: 0.0.40
codegen_flags: <defaults>
</compile_context>

<pallas_src>
import jax
import jax.numpy as jnp
from jax import lax
from jax.experimental import pallas as pl
from jax.experimental.pallas import tpu as pltpu


def _mean_pool_kernel(mask_ref, x_ref, o_ref, acc_emb, acc_msk):
    # mask_ref: (TB, 1, TS)   attention mask tile (native dtype, S lane-dense)
    # x_ref:    (TB, TS, TH)  hidden-state tile (native dtype)
    # o_ref:    (TB, 1, TH)   pooled output tile
    # acc_emb:  (TB, 1, TH)   f32 running masked sum
    # acc_msk:  (TB, 1, 1)    f32 running mask count
    s = pl.program_id(2)

    @pl.when(s == 0)
    def _init():
        acc_emb[...] = jnp.zeros_like(acc_emb)
        acc_msk[...] = jnp.zeros_like(acc_msk)

    # Masked sum over the sequence tile on the MXU: per batch row,
    # (1, TS) @ (TS, TH) -> (1, TH), accumulated in f32.
    m = mask_ref[...].astype(x_ref.dtype)                     # 0/1, exact in bf16
    acc_emb[...] += lax.dot_general(
        m, x_ref[...],
        dimension_numbers=(((2,), (1,)), ((0,), (0,))),       # contract S, batch B
        preferred_element_type=jnp.float32,
    )
    acc_msk[...] += jnp.sum(mask_ref[...].astype(jnp.float32), axis=2, keepdims=True)

    @pl.when(s == pl.num_programs(2) - 1)
    def _finalize():
        inv = 1.0 / jnp.maximum(acc_msk[...], 1e-9)           # torch.clamp(min=1e-9)
        o_ref[...] = (acc_emb[...] * inv).astype(o_ref.dtype)


def _vmem_capacity_bytes():
    """Physical VMEM of the attached TPU; conservative (v7x) fallback."""
    try:
        return int(pltpu.get_tpu_info().vmem_capacity_bytes)
    except Exception:
        return 64 * 1024 * 1024


def _choose_tiles(B, S, H, itemsize, vmem_cap):
    """Pick (TB, TS, TH).

    Priorities (from perf review):
      1. TB a multiple of 8 (full sublanes on the pooled output / accumulator),
         with >= 2 batch grid steps where divisors allow (v7x has 2 TCs).
      2. x tile as large as the generation-aware budget allows
         (~16 MiB on 128-MiB-VMEM parts, ~10 MiB on 64-MiB v7x).
      3. Tile S (the reduction axis) first, then H; never silently keep an
         over-budget tile.
      4. If the batch axis still has a single step, split H into >= 2 column
         blocks so there is a second "parallel" axis.
    """
    budget = max(2 * 1024 * 1024, min(16 * 1024 * 1024, vmem_cap // 6))

    # Legal tile sizes (block-shape rule: multiple of the (8,128) unit or full dim).
    tb_cands = [d for d in range(B, 0, -1) if B % d == 0 and (d % 8 == 0 or d == B)]
    ts_cands = [d for d in range(S, 0, -1) if S % d == 0 and (d % 128 == 0 or d == S)]
    th_cands = [d for d in range(H, 0, -1) if H % d == 0 and (d % 128 == 0 or d == H)]

    # --- TB: prefer a multiple-of-8 divisor that leaves >= 2 batch steps and can
    # still fit the budget with the smallest legal (TS, TH) tile.
    multi = [d for d in tb_cands if d % 8 == 0 and B // d >= 2]
    min_tile = ts_cands[-1] * th_cands[-1] * itemsize
    tb = None
    for d in multi:
        if d * min_tile <= budget:
            tb = d
            break
    if tb is None:
        tb = multi[-1] if multi else tb_cands[0]

    # --- TS / TH: biggest tile under budget; keep full H (lane-dense output)
    # if possible and shrink the reduction tile TS first.
    def pick(tb_):
        for th_ in th_cands:
            for ts_ in ts_cands:
                if tb_ * ts_ * th_ * itemsize <= budget:
                    return ts_, th_
        return ts_cands[-1], th_cands[-1]

    ts, th = pick(tb)

    # --- v7x megacore: guarantee >= 2 "parallel" grid steps overall.
    if B // tb == 1 and H // th == 1:
        h_split = [d for d in th_cands if d % 128 == 0 and H // d >= 2]
        if h_split:
            th = h_split[0]
            ts = next((t for t in ts_cands if tb * t * th * itemsize <= budget),
                      ts_cands[-1])

    return tb, ts, th


def mean_pooling(last_hidden_state, attention_mask):
    """Pallas TPU implementation of MeanPooling.forward.

    last_hidden_state: [B, S, H] float (f32 or bf16)
    attention_mask:    [B, S]    any numeric / bool dtype
    returns:           [B, H]    same dtype as last_hidden_state
    """
    B, S, H = last_hidden_state.shape
    x_dtype = last_hidden_state.dtype
    itemsize = last_hidden_state.dtype.itemsize

    vmem_cap = _vmem_capacity_bytes()
    TB, TS, TH = _choose_tiles(B, S, H, itemsize, vmem_cap)
    grid = (B // TB, H // TH, S // TS)          # reduction axis (S) last

    # Keep S on lanes; no host-side [B, S, 1] expansion.
    mask3 = attention_mask.reshape(B, 1, S)

    flops = 2 * B * S * H
    bytes_accessed = (last_hidden_state.size * itemsize
                      + attention_mask.size * attention_mask.dtype.itemsize
                      + B * H * itemsize)

    out3 = pl.pallas_call(
        _mean_pool_kernel,
        out_shape=jax.ShapeDtypeStruct((B, 1, H), x_dtype),
        grid=grid,
        in_specs=[
            pl.BlockSpec((TB, 1, TS), lambda b, h, s: (b, 0, s)),     # mask
            pl.BlockSpec((TB, TS, TH), lambda b, h, s: (b, s, h)),    # hidden states
        ],
        # Same output block for every s-step -> resident accumulator target.
        out_specs=pl.BlockSpec((TB, 1, TH), lambda b, h, s: (b, 0, h)),
        scratch_shapes=[
            pltpu.VMEM((TB, 1, TH), jnp.float32),   # masked-embedding sum
            pltpu.VMEM((TB, 1, 1), jnp.float32),    # mask count
        ],
        compiler_params=pltpu.CompilerParams(
            dimension_semantics=("parallel", "parallel", "arbitrary"),
            vmem_limit_bytes=int(vmem_cap * 3 // 4),
        ),
        cost_estimate=pl.CostEstimate(
            flops=flops, transcendentals=0, bytes_accessed=bytes_accessed),
    )(mask3, last_hidden_state)

    return out3.reshape(B, H)


def _reference(last_hidden_state, attention_mask):
    # Pure-JAX reference matching the PyTorch MeanPooling semantics exactly.
    mask = attention_mask.astype(jnp.float32)[..., None]
    sum_emb = jnp.sum(last_hidden_state.astype(jnp.float32) * mask, axis=1)
    sum_mask = jnp.maximum(jnp.sum(mask, axis=1), 1e-9)
    return (sum_emb / sum_mask).astype(last_hidden_state.dtype)


if __name__ == "__main__":
    key = jax.random.PRNGKey(0)
    B, S, H = 2, 8, 32

    k_x, k_m = jax.random.split(key)
    # Values are kept bf16-representable so the MXU contraction (whose f32 path
    # may internally use bf16 passes) is exact against the f32 reference; the
    # 0/1 mask is exact in any float dtype.
    last_hidden_state = jax.random.normal(k_x, (B, S, H), dtype=jnp.float32)
    last_hidden_state = last_hidden_state.astype(jnp.bfloat16).astype(jnp.float32)
    # Deterministic mask with some padded (zero) positions; first token kept.
    attention_mask = (jax.random.uniform(k_m, (B, S)) > 0.3).astype(jnp.int32)
    attention_mask = attention_mask.at[:, 0].set(1)

    out = jax.block_until_ready(mean_pooling(last_hidden_state, attention_mask))
    ref = _reference(last_hidden_state, attention_mask)

    assert out.shape == (B, H)
    assert jnp.allclose(out, ref, atol=1e-4, rtol=1e-4), "mismatch vs reference"

    print("KERNEL_OK")
</pallas_src>

<mosaic_0001>
module attributes {stable_mosaic.version = 11 : i64} {
  func.func @_mean_pool_kernel(%arg0: i32, %arg1: i32, %arg2: i32, %arg3: memref<2x1x8xi32, #tpu.memory_space<vmem>>, %arg4: memref<2x8x32xf32, #tpu.memory_space<vmem>>, %arg5: memref<2x1x32xf32, #tpu.memory_space<vmem>>, %arg6: memref<2x1x32xf32, #tpu.memory_space<vmem>>, %arg7: memref<2x1x1xf32, #tpu.memory_space<vmem>>) attributes {dimension_semantics = [#tpu.dimension_semantics<parallel>, #tpu.dimension_semantics<parallel>, #tpu.dimension_semantics<arbitrary>], iteration_bounds = array<i64: 1, 1, 1>, scalar_prefetch = 0 : i64, scratch_operands = 2 : i64, tpu.core_type = #tpu.core_type<tc>, window_params = [{transform_indices = @transform_0, window_bounds = array<i64: 2, 1, 8>}, {transform_indices = @transform_1, window_bounds = array<i64: 2, 8, 32>}, {transform_indices = @transform_2, window_bounds = array<i64: 2, 1, 32>}]} {
    %c0_i32 = arith.constant 0 : i32
    %0 = arith.cmpi eq, %arg2, %c0_i32 : i32
    %1 = arith.extui %0 : i1 to i32
    %c0_i32_0 = arith.constant 0 : i32
    %2 = arith.cmpi ne, %1, %c0_i32_0 : i32
    scf.if %2 {
      %cst_24 = arith.constant 0.000000e+00 : f32
      %20 = vector.broadcast %cst_24 : f32 to vector<2x1x32xf32>
      %c0_25 = arith.constant 0 : index
      %c0_26 = arith.constant 0 : index
      %c0_27 = arith.constant 0 : index
      %21 = vector.load %arg6[%c0_25, %c0_26, %c0_27] : memref<2x1x32xf32, #tpu.memory_space<vmem>>, vector<2x1x32xf32>
      tpu.vector_store %arg6[%c0_25, %c0_26, %c0_27], %20 {strides = array<i32>} : memref<2x1x32xf32, #tpu.memory_space<vmem>>, vector<2x1x32xf32>,
      %cst_28 = arith.constant 0.000000e+00 : f32
      %22 = vector.broadcast %cst_28 : f32 to vector<2x1x1xf32>
      %c0_29 = arith.constant 0 : index
      %c0_30 = arith.constant 0 : index
      %c0_31 = arith.constant 0 : index
      %23 = vector.load %arg7[%c0_29, %c0_30, %c0_31] : memref<2x1x1xf32, #tpu.memory_space<vmem>>, vector<2x1x1xf32>
      tpu.vector_store %arg7[%c0_29, %c0_30, %c0_31], %22 {strides = array<i32>} : memref<2x1x1xf32, #tpu.memory_space<vmem>>, vector<2x1x1xf32>,
    } else {
    }
    %c0 = arith.constant 0 : index
    %c0_1 = arith.constant 0 : index
    %c0_2 = arith.constant 0 : index
    %3 = vector.load %arg3[%c0, %c0_1, %c0_2] : memref<2x1x8xi32, #tpu.memory_space<vmem>>, vector<2x1x8xi32>
    %4 = arith.sitofp %3 : vector<2x1x8xi32> to vector<2x1x8xf32>
    %c0_3 = arith.constant 0 : index
    %c0_4 = arith.constant 0 : index
    %c0_5 = arith.constant 0 : index
    %5 = vector.load %arg6[%c0_3, %c0_4, %c0_5] : memref<2x1x32xf32, #tpu.memory_space<vmem>>, vector<2x1x32xf32>
    %c0_6 = arith.constant 0 : index
    %c0_7 = arith.constant 0 : index
    %c0_8 = arith.constant 0 : index
    %6 = vector.load %arg4[%c0_6, %c0_7, %c0_8] : memref<2x8x32xf32, #tpu.memory_space<vmem>>, vector<2x8x32xf32>
    %cst = arith.constant dense<0.000000e+00> : vector<2x1x32xf32>
    %7 = tpu.matmul %4, %6, %cst {dimension_numbers = #tpu.dot_dimension_numbers<[2], [1], [1], [2], [0, 0, 0, 1, 1, 2], [0], [0]>} : vector<2x1x8xf32>, vector<2x8x32xf32>, vector<2x1x32xf32> -> vector<2x1x32xf32>
    %8 = arith.addf %5, %7 : vector<2x1x32xf32>
    %c0_9 = arith.constant 0 : index
    %c0_10 = arith.constant 0 : index
    %c0_11 = arith.constant 0 : index
    %9 = vector.load %arg6[%c0_9, %c0_10, %c0_11] : memref<2x1x32xf32, #tpu.memory_space<vmem>>, vector<2x1x32xf32>
    tpu.vector_store %arg6[%c0_9, %c0_10, %c0_11], %8 {strides = array<i32>} : memref<2x1x32xf32, #tpu.memory_space<vmem>>, vector<2x1x32xf32>,
    %c0_12 = arith.constant 0 : index
    %c0_13 = arith.constant 0 : index
    %c0_14 = arith.constant 0 : index
    %10 = vector.load %arg7[%c0_12, %c0_13, %c0_14] : memref<2x1x1xf32, #tpu.memory_space<vmem>>, vector<2x1x1xf32>
    %c0_15 = arith.constant 0 : index
    %c0_16 = arith.constant 0 : index
    %c0_17 = arith.constant 0 : index
    %11 = vector.load %arg3[%c0_15, %c0_16, %c0_17] : memref<2x1x8xi32, #tpu.memory_space<vmem>>, vector<2x1x8xi32>
    %12 = arith.sitofp %11 : vector<2x1x8xi32> to vector<2x1x8xf32>
    %cst_18 = arith.constant dense<0.000000e+00> : vector<2x1xf32>
    %13 = vector.multi_reduction <add>, %12, %cst_18 [2] : vector<2x1x8xf32> to vector<2x1xf32>
    %14 = vector.shape_cast %13 : vector<2x1xf32> to vector<2x1x1xf32>
    %15 = arith.addf %10, %14 : vector<2x1x1xf32>
    %c0_19 = arith.constant 0 : index
    %c0_20 = arith.constant 0 : index
    %c0_21 = arith.constant 0 : index
    %16 = vector.load %arg7[%c0_19, %c0_20, %c0_21] : memref<2x1x1xf32, #tpu.memory_space<vmem>>, vector<2x1x1xf32>
    tpu.vector_store %arg7[%c0_19, %c0_20, %c0_21], %15 {strides = array<i32>} : memref<2x1x1xf32, #tpu.memory_space<vmem>>, vector<2x1x1xf32>,
    %c0_i32_22 = arith.constant 0 : i32
    %17 = arith.cmpi eq, %arg2, %c0_i32_22 : i32
    %18 = arith.extui %17 : i1 to i32
    %c0_i32_23 = arith.constant 0 : i32
    %19 = arith.cmpi ne, %18, %c0_i32_23 : i32
    scf.if %19 {
      %c0_24 = arith.constant 0 : index
      %c0_25 = arith.constant 0 : index
      %c0_26 = arith.constant 0 : index
      %20 = vector.load %arg7[%c0_24, %c0_25, %c0_26] : memref<2x1x1xf32, #tpu.memory_space<vmem>>, vector<2x1x1xf32>
      %cst_27 = arith.constant 9.99999971E-10 : f32
      %21 = vector.broadcast %cst_27 : f32 to vector<2x1x1xf32>
      %22 = arith.maximumf %20, %21 : vector<2x1x1xf32>
      %cst_28 = arith.constant 1.000000e+00 : f32
      %23 = vector.broadcast %cst_28 : f32 to vector<2x1x1xf32>
      %24 = arith.divf %23, %22 : vector<2x1x1xf32>
      %c0_29 = arith.constant 0 : index
      %c0_30 = arith.constant 0 : index
      %c0_31 = arith.constant 0 : index
      %25 = vector.load %arg6[%c0_29, %c0_30, %c0_31] : memref<2x1x32xf32, #tpu.memory_space<vmem>>, vector<2x1x32xf32>
      %26 = vector.broadcast %24 : vector<2x1x1xf32> to vector<2x1x32xf32>
      %27 = arith.mulf %25, %26 : vector<2x1x32xf32>
      %c0_32 = arith.constant 0 : index
      %c0_33 = arith.constant 0 : index
      %c0_34 = arith.constant 0 : index
      %28 = vector.load %arg5[%c0_32, %c0_33, %c0_34] : memref<2x1x32xf32, #tpu.memory_space<vmem>>, vector<2x1x32xf32>
      tpu.vector_store %arg5[%c0_32, %c0_33, %c0_34], %27 {strides = array<i32>} : memref<2x1x32xf32, #tpu.memory_space<vmem>>, vector<2x1x32xf32>,
    } else {
    }
    return
  }
  func.func @transform_0(%arg0: i32, %arg1: i32, %arg2: i32) -> (i32, i32, i32) {
    %c0_i32 = arith.constant 0 : i32
    %c0_i32_0 = arith.constant 0 : i32
    return %arg0, %c0_i32, %arg2 : i32, i32, i32
  }
  func.func @transform_1(%arg0: i32, %arg1: i32, %arg2: i32) -> (i32, i32, i32) {
    %c0_i32 = arith.constant 0 : i32
    return %arg0, %arg2, %arg1 : i32, i32, i32
  }
  func.func @transform_2(%arg0: i32, %arg1: i32, %arg2: i32) -> (i32, i32, i32) {
    %c0_i32 = arith.constant 0 : i32
    %c0_i32_0 = arith.constant 0 : i32
    return %arg0, %c0_i32, %arg1 : i32, i32, i32
  }
}

</mosaic_0001>

<bundles_post_ra>
// kernel: tpu_custom_call.1
= control target key start
LH: loop header
LB: loop body
LE: loop exit
PB: predicated region body
PF: predicated region fallthrough
CT: control target
= control target key end

     0   :  { %7 = vsyncpa [#allocation5], 0  ;;  %s431_s0 = inlined_call_operand.hbm [shape: s32[2,1,8], index: 0, kind: input, shape index: {}]   ;;  %s432_s1 = inlined_call_operand.hbm [shape: f32[2,8,32], index: 1, kind: input, shape index: {}]   ;;  %s433_s2 = inlined_call_operand.hbm [shape: f32[2,1,32], index: 2, kind: output, shape index: {}]  }
   0x1   :  { %8 = vsyncpa [#allocation8], 0 }
   0x2   :  { %9 = vsyncpa [#allocation6], 0  ;;  %s379_s9 = smov [#allocation4]  }
   0x3   :  { %s15_s10 = sshll.u32 %s379_s9, 4  ;;  %s16_s10 = int_to_ptr.vmem [resolvable:$true] %s15_s10 }
   0x4   :  { %s321_s11 = scalar_lea.vmem %s16_s10, 32  ;;  %p326_p1 = scmp.lt.s32.totalorder %s16_s10, %s16_s10 }
   0x5   :  { %p322_p0 = scmp.ne.s32.totalorder %s16_s10, %s321_s11  ;;  %p327_p2 = scmp.lt.s32.totalorder %s321_s11, %s321_s11 }
   0x7   :  { %p328_p3 = por %p327_p2, %p326_p1 }
   0x9   :  { %p329_p4 = pnand %p328_p3, %p322_p0 }
   0xb   :  { %332 = shalt.err (!%p329_p4)
}
   0xc   :  { %s380_s12 = smov 16   ;;  %s381_s13 = smov 1  }
   0xd   :  { %21 = dma.hbm_to_vmem [thread:$0]  %s431_s0, 32, %s16_s10, [#allocation5], %s380_s12, %s380_s12, %s381_s13  }
   0xe   :  { %s382_s16 = smov [#allocation7]  }
   0xf   :  { %s27_s17 = sshll.u32 %s382_s16, 4  ;;  %s28_s17 = int_to_ptr.vmem [resolvable:$true] %s27_s17 }
  0x10   :  { %s341_s18 = scalar_lea.vmem %s28_s17, 256  ;;  %p346_p6 = scmp.lt.s32.totalorder %s28_s17, %s28_s17 }
  0x11   :  { %p342_p5 = scmp.ne.s32.totalorder %s28_s17, %s341_s18  ;;  %p347_p7 = scmp.lt.s32.totalorder %s341_s18, %s341_s18 }
  0x13   :  { %p348_p8 = por %p347_p7, %p346_p6 }
  0x15   :  { %p349_p9 = pnand %p348_p8, %p342_p5 }
  0x17   :  { %352 = shalt.err (!%p349_p9)
}
  0x18   :  { %s383_s19 = smov 128   ;;  %s384_s20 = smov 8  }
  0x19   :  { %33 = dma.hbm_to_vmem [thread:$0]  %s432_s1, 256, %s28_s17, [#allocation8], %s383_s19, %s383_s19, %s384_s20  }
  0x1a   :  { %373 = dma.done.wait [#allocation5], 32  }
  0x1b   :  { %374 = vsyncadd [#allocation5], 4294967264 }
  0x1c   :  { %375 = dma.done.wait [#allocation8], 256  }
  0x1d   :  { %376 = vsyncadd [#allocation8], 4294967040  ;;  %v385_v0 = vmov 0.0   ;;  %vm386_vm0 = vmmov 0   ;;  %vm47_vm1 = vcmask 0   ;;  %vm216_vm2 = vcmask 57344  }
  0x1e   :  { %287 = vmatprep.subr.mxu0 %v385_v0  ;;  %289 = vmatprep.mubr.msk.f32.mxu0 %vm386_vm0, %v385_v0  ;;  %48 = vst.msk [vmem:[#allocation3] sm:$0x1] %vm47_vm1, %v385_v0  ;;  %49 = vst.msk [vmem:[#allocation3 + $0x1] sm:$0x1] %vm47_vm1, %v385_v0  ;;  %v212_v1 = vld [vmem:[#allocation4] sm:$0x1]  ;;  %v246_v34 = vlaneseq }
  0x1f   :  { %292 = vmatprep.subr.mxu1 %v385_v0  ;;  %294 = vmatprep.mubr.msk.f32.mxu1 %vm386_vm0, %v385_v0  ;;  %v213_v2 = vld [vmem:[#allocation4 + $0x1] sm:$0x1]  ;;  %v56_v3 = vld [vmem:[#allocation7] sm:$0xff]  ;;  %v214_v4 = vcvt.s32.f32 %v212_v1  ;;  %v50_v6 = vld [vmem:[#allocation4] sm:$0x1]  ;;  %vm58_vm3 = vcmask 64512  }
  0x20   :  { %v215_v5 = vcvt.s32.f32 %v213_v2  ;;  %288 = vmatpush3.msra.mxu0 %v56_v3  ;;  %v57_v7 = vld [vmem:[#allocation7 + $0x8] sm:$0xff]  ;;  %v51_v8 = vld [vmem:[#allocation4 + $0x1] sm:$0x1]  ;;  %v52_v9 = vcvt.s32.f32 %v50_v6  ;;  %v387_v13 = vmov 0   ;;  %vm44_vm4 = vcmask 253952   ;;  %s388_s0 = smov [#allocation9]  }
  0x21   :  { %293 = vmatpush3.msra.mxu1 %v57_v7  ;;  %v53_v10 = vcvt.s32.f32 %v51_v8  ;;  %v217_v11 = vsel %vm216_vm2, %v214_v4, 0.0  ;;  %307 = vset.pattern.permute.xlu1 %v387_v13  ;;  %45 = vst.msk [vmem:[#allocation2] sm:$0x1] %vm44_vm4, %v385_v0  ;;  %46 = vst.msk [vmem:[#allocation2 + $0x1] sm:$0x1] %vm44_vm4, %v385_v0  ;;  %v247_v35 = vshrl.u32 %v246_v34, 7 }
  0x22   :  { %218 = vadd.xlane.f32.xlu0 %v217_v11  ;;  %290 = vmatmul.mubr.msk.f32.vlgmr.msra.gmra.mxu0 %vm58_vm3, %v52_v9  ;;  %v220_v12 = vsel %vm216_vm2, %v215_v5, 0.0  ;;  %s268_s1 = sshll.u32 %s388_s0, 4  ;;  %s269_s1 = int_to_ptr.vmem [resolvable:$true] %s268_s1 }
  0x23   :  { %295 = vmatmul.mubr.msk.f32.vlgmr.msra.gmra.mxu1 %vm58_vm3, %v53_v10  ;;  %308 = vset.pattern.permute.xlu0 %v387_v13  ;;  %v248_v36 = vsub.s32 0, %v247_v35  ;;  %s353_s23 = scalar_lea.vmem %s269_s1, 32  ;;  %p358_p11 = scmp.lt.s32.totalorder %s269_s1, %s269_s1 }
  0x24   :  { %p354_p10 = scmp.ne.s32.totalorder %s269_s1, %s353_s23  ;;  %p359_p12 = scmp.lt.s32.totalorder %s353_s23, %s353_s23 }
  0x25   :  { %v210_v14 = vld [vmem:[#allocation3] sm:$0x1]  ;;  %v211_v17 = vld [vmem:[#allocation3 + $0x1] sm:$0x1] }
  0x26   :  { %221 = vadd.xlane.f32.xlu0 %v220_v12  ;;  %p360_p13 = por %p359_p12, %p358_p11 }
  0x28   :  { %v54_v26 = vld [vmem:[#allocation2] sm:$0x1]  ;;  %v55_v27 = vld [vmem:[#allocation2 + $0x1] sm:$0x1]  ;;  %p361_p0 = pnand %p360_p13, %p354_p10 }
  0xab   :  { %v219_v15 = vpop.xlane.xlu0 %218 }
  0xac   :  { %v223_v16 = vadd.f32 %v219_v15, %v210_v14 }
  0xae   :  { %226 = vst.msk [vmem:[#allocation3] sm:$0x1] %vm47_vm1, %v223_v16 }
  0xaf   :  { %v222_v18 = vpop.xlane.xlu0 %221 }
  0xb0   :  { %v224_v19 = vadd.f32 %v222_v18, %v211_v17 }
  0xb2   :  { %227 = vst.msk [vmem:[#allocation3 + $0x1] sm:$0x1] %vm47_vm1, %v224_v19 }
  0xb5   :  { %v231_v20 = vld [vmem:[#allocation3] sm:$0x1] }
  0xb6   :  { %v233_v21 = vmax.f32 %v231_v20, 1e-09 }
  0xb8   :  { %309 = vrcp.f32 %v233_v21 }
  0xb9   :  { %v232_v22 = vld [vmem:[#allocation3 + $0x1] sm:$0x1] }
  0xba   :  { %v234_v23 = vmax.f32 %v232_v22, 1e-09 }
  0xbc   :  { %311 = vrcp.f32 %v234_v23 }
  0xc5   :  { %v310_v24 = vpop.eup %309 }
  0xc6   :  { %243 = vperm.xlu1 %307, %v310_v24  }
  0xc9   :  { %v312_v25 = vpop.eup %311 }
  0xca   :  { %252 = vperm.xlu1 %307, %v312_v25  }
  0xe2   :  { %v128_v28 = vpop.f32.mrf.mxu0 }
  0xe3   :  { %v205_v29 = vadd.f32 %v128_v28, %v54_v26  ;;  %v201_v30 = vpop.f32.mrf.mxu1 }
  0xe4   :  { %v206_v31 = vadd.f32 %v201_v30, %v55_v27  ;;  %v291_v32 = vpop.f32.mrf.mxu0 }
  0xe5   :  { %208 = vst.msk [vmem:[#allocation2] sm:$0x1] %vm44_vm4, %v205_v29  ;;  %v296_v33 = vpop.f32.mrf.mxu1 }
  0xe6   :  { %209 = vst.msk [vmem:[#allocation2 + $0x1] sm:$0x1] %vm44_vm4, %v206_v31 }
  0xec   :  { %v239_v38 = vld [vmem:[#allocation2] sm:$0x1] }
  0xed   :  { %v240_v42 = vld [vmem:[#allocation2 + $0x1] sm:$0x1] }
 0x141   :  { %v244_v37 = vpop.permute.xlu1 %243 }
 0x142   :  { %v249_v39 = vrot.slane %v244_v37, %v248_v36 }
 0x144   :  { %v259_v40 = vmul.f32 %v249_v39, %v239_v38 }
 0x145   :  { %v253_v41 = vpop.permute.xlu1 %252 }
 0x146   :  { %261 = vst.msk [vmem:[#allocation9] sm:$0x1] %vm44_vm4, %v259_v40  ;;  %v258_v43 = vrot.slane %v253_v41, %v248_v36 }
 0x148   :  { %v260_v44 = vmul.f32 %v258_v43, %v240_v42 }
 0x14a   :  { %262 = vst.msk [vmem:[#allocation9 + $0x1] sm:$0x1] %vm44_vm4, %v260_v44 }
 0x14b   :  { %364 = shalt.err (!%p361_p0)
}
 0x14c   :  { %274 = dma.vmem_to_hbm [thread:$0]  %s269_s1, 32, %s433_s2, [#allocation6], %s380_s12, %s380_s12, %s381_s13  }
 0x14d   :  { %377 = dma.done.wait [#allocation6], 32  }
 0x14e   :  { %378 = vsyncadd [#allocation6], 4294967264 }
 0x14f   :  { %278 = vsyncpa [#allocation5], 1 }
 0x150   :  { %279 = vsyncpa [#allocation8], 1 }
 0x151   :  { %280 = vsyncpa [#allocation6], 1 }

</bundles_post_ra>
